<compile_context>
chip_gen: v7x
topology: tpu7x:2x2x1
jax: 0.10.0
libtpu: 0.0.40
codegen_flags: <defaults>
</compile_context>

<pallas_src>
import functools

import jax
import jax.numpy as jnp
from jax.experimental import pallas as pl
from jax.experimental.pallas import tpu as pltpu


def _conv_bn_silu_kernel(w_ref, b_ref, m_ref, x_ref, o_ref, *,
                         H, W, K, P, TB, TC2, approx_sigmoid):
    """One grid step: TB images x TC2 output channels of fused conv + BN + SiLU.

    w_ref: (K*K, TC2, C1)   BN-folded per-tap weights (compute dtype)
    b_ref: (TC2, 1)         BN-folded bias (f32)
    m_ref: (K*K, H*W)       per-tap 0/1 validity masks (compute dtype)
    x_ref: (TB, C1, H*W)    flattened, UNPADDED input (compute dtype)
    o_ref: (TB, TC2, H*W)   lane-dense output (compute dtype)
    """
    HW = H * W
    w = w_ref[...]                         # (K*K, TC2, C1) small, hoisted
    masks = m_ref[...]                     # (K*K, HW)
    bias = b_ref[...]                      # (TC2, 1) f32

    for tb in range(TB):                   # TB is small (1-2): static unroll
        x2d = x_ref[tb]                    # (C1, HW)
        acc = jnp.broadcast_to(bias, (TC2, HW))       # f32 accumulator init = folded bias
        for t in range(K * K):
            ki, kj = divmod(t, K)
            di, dj = ki - P, kj - P
            s = di * W + dj                # flattened source offset of this tap
            # Circular roll brings source pixel x[p + s] to lane p (XLU, off the VPU/MXU
            # critical path) ...
            xs = x2d if s == 0 else pltpu.roll(x2d, shift=(-s) % HW, axis=1)
            # ... and the mask zeroes lanes whose source pixel lies outside the image
            # (this also kills the lanes that wrapped around the image boundary).
            if di != 0 or dj != 0:
                xs = xs * masks[t:t + 1, :]
            # Per-tap accumulating MXU matmul; operands in compute dtype, f32 accumulate.
            acc = acc + jnp.dot(w[t], xs, preferred_element_type=jnp.float32)
        # SiLU: y * sigmoid(y). exp and reciprocal both live on the EUP slot.
        sig = pl.reciprocal(1.0 + jnp.exp(-acc), approx=approx_sigmoid)
        o_ref[tb] = (acc * sig).astype(o_ref.dtype)   # lane-dense store (HW % 128 == 0)


def conv_bn_silu(x, weight, gamma, beta, running_mean, running_var, *,
                 eps=1e-5, batch_block=1, c2_block=None):
    """Forward of ultralytics Conv (eval): SiLU(BN(Conv2d(x, weight, bias=False, pad=k//2))).

    x:      (N, C1, H, W)                 compute dtype (f32 or bf16)
    weight: (C2, C1, K, K)                stride=1, groups=1, dilation=1
    gamma/beta/running_mean/running_var: (C2,) eval-mode BatchNorm parameters.
    """
    N, C1, H, W = x.shape
    C2, C1w, K, K2 = weight.shape
    assert C1w == C1 and K2 == K, "groups != 1 / non-square kernels not supported"
    assert K % 2 == 1, "autopad 'same' requires odd k"
    P = K // 2                            # autopad(k) for stride=1, dilation=1
    HW = H * W
    # Perf contract: lane-dense blocks (unmasked vld/vst) require H*W % 128 == 0.
    assert HW % 128 == 0, f"H*W={HW} must be a multiple of 128"
    TB = batch_block
    assert N % TB == 0, "batch_block must divide N"
    if c2_block is None:
        c2_block = C2 if (C2 <= 256 or C2 % 256 != 0) else 256
    TC2 = c2_block
    assert C2 % TC2 == 0, "c2_block must divide C2"
    assert TC2 == C2 or TC2 % 8 == 0, "C2 tile must be a sublane multiple"

    cdt = x.dtype                         # MXU operand dtype (bf16 when the model is bf16)
    itemsize = x.dtype.itemsize

    # ---- Fold eval-mode BatchNorm into conv weight/bias in f32, then cast operands ----
    scale = (gamma.astype(jnp.float32) /
             jnp.sqrt(running_var.astype(jnp.float32) + eps))             # (C2,)
    w_f = weight.astype(jnp.float32) * scale[:, None, None, None]         # (C2,C1,K,K)
    w_taps = jnp.transpose(w_f, (2, 3, 0, 1)).reshape(K * K, C2, C1).astype(cdt)
    b_f = (beta.astype(jnp.float32)
           - running_mean.astype(jnp.float32) * scale).reshape(C2, 1)     # f32

    # ---- Per-tap validity masks: lane p=(r,c) valid for tap (di,dj) iff the source
    #      pixel (r+di, c+dj) lies inside the image ----
    idx = jnp.arange(HW, dtype=jnp.int32)
    row, col = idx // W, idx % W
    masks = jnp.stack(
        [((row + (ki - P) >= 0) & (row + (ki - P) < H) &
          (col + (kj - P) >= 0) & (col + (kj - P) < W))
         for ki in range(K) for kj in range(K)], axis=0).astype(cdt)      # (K*K, HW)

    # No halo pad: the kernel handles the halo with roll + mask, so x is read from HBM once.
    x_flat = x.reshape(N, C1, HW)

    kernel = functools.partial(
        _conv_bn_silu_kernel, H=H, W=W, K=K, P=P, TB=TB, TC2=TC2,
        approx_sigmoid=(cdt == jnp.bfloat16))

    # ---- VMEM budget from the actual block sizes (double-buffered I/O + temporaries) ----
    blk_in = (TB * C1 * HW + K * K * TC2 * C1 + K * K * HW) * itemsize + TC2 * 4
    blk_out = TB * TC2 * HW * itemsize
    temps = TC2 * HW * 4 + 2 * C1 * HW * itemsize         # f32 accumulator + rolled tap
    vmem_limit = int(min(max(2 * (blk_in + blk_out) + temps + (4 << 20), 16 << 20),
                         64 << 20))                       # stay within v7x's 64 MiB

    out_flat = pl.pallas_call(
        kernel,
        out_shape=jax.ShapeDtypeStruct((N, C2, HW), cdt),
        grid_spec=pltpu.PrefetchScalarGridSpec(
            num_scalar_prefetch=0,
            grid=(N // TB, C2 // TC2),
            in_specs=[
                # Small constant-ish operands (index only moves with the C2 tile).
                pl.BlockSpec((K * K, TC2, C1), lambda n, j: (0, j, 0)),
                pl.BlockSpec((TC2, 1), lambda n, j: (j, 0)),
                pl.BlockSpec((K * K, HW), lambda n, j: (0, 0)),
                # TB images per grid step; block index independent of j so the same x
                # block is reused across the (fast) C2-tile axis without re-DMA.
                pl.BlockSpec((TB, C1, HW), lambda n, j: (n, 0, 0)),
            ],
            out_specs=pl.BlockSpec((TB, TC2, HW), lambda n, j: (n, j, 0)),
        ),
        compiler_params=pltpu.CompilerParams(
            dimension_semantics=("parallel", "parallel"),
            vmem_limit_bytes=vmem_limit),
    )(w_taps, b_f, masks, x_flat)

    return out_flat.reshape(N, C2, H, W)


def conv_bn_silu_reference(x, weight, gamma, beta, mean, var, eps=1e-5):
    """Pure-JAX reference matching the PyTorch Conv.forward (eval mode)."""
    K = weight.shape[-1]
    P = K // 2
    y = jax.lax.conv_general_dilated(
        x, weight, window_strides=(1, 1), padding=[(P, P), (P, P)],
        dimension_numbers=("NCHW", "OIHW", "NCHW"))
    s = gamma / jnp.sqrt(var + eps)
    y = y * s[None, :, None, None] + (beta - mean * s)[None, :, None, None]
    return y * jax.nn.sigmoid(y)          # SiLU


def _run_case(key, *, N, C1, C2, H, W, K, dtype, configs, tol):
    kx, kw, kg, kb, km, kv = jax.random.split(key, 6)
    x = jax.random.normal(kx, (N, C1, H, W), dtype=jnp.float32)
    bound = 1.0 / ((C1 * K * K) ** 0.5)
    weight = jax.random.uniform(kw, (C2, C1, K, K), jnp.float32, -bound, bound)
    gamma = jax.random.uniform(kg, (C2,), jnp.float32, 0.5, 1.5)
    beta = 0.1 * jax.random.normal(kb, (C2,), jnp.float32)
    mean = 0.1 * jax.random.normal(km, (C2,), jnp.float32)
    var = jax.random.uniform(kv, (C2,), jnp.float32, 0.5, 1.5)

    x = x.astype(dtype)
    ref = conv_bn_silu_reference(x.astype(jnp.float32), weight, gamma, beta, mean, var)
    for tb, c2b in configs:
        out = conv_bn_silu(x, weight, gamma, beta, mean, var,
                           batch_block=tb, c2_block=c2b)
        out = jax.block_until_ready(out)
        assert out.shape == ref.shape and out.dtype == dtype
        assert jnp.allclose(out.astype(jnp.float32), ref, atol=tol, rtol=tol), \
            f"mismatch vs reference (K={K}, dtype={dtype}, batch_block={tb}, c2_block={c2b})"


if __name__ == "__main__":
    key = jax.random.PRNGKey(0)
    k1, k2, k3 = jax.random.split(key, 3)
    # Common YOLO Conv: k=3, stride=1, 'same' padding; batch blocking and C2 tiling variants.
    _run_case(k1, N=2, C1=4, C2=16, H=16, W=16, K=3, dtype=jnp.float32,
              configs=((1, None), (2, None), (1, 8)), tol=2e-2)
    # Module default k=1 (pointwise conv).
    _run_case(k2, N=2, C1=4, C2=8, H=16, W=16, K=1, dtype=jnp.float32,
              configs=((2, None),), tol=2e-2)
    # bf16 operands -> native-precision MXU path (f32 accumulation), with C2 tiling.
    _run_case(k3, N=2, C1=4, C2=16, H=16, W=16, K=3, dtype=jnp.bfloat16,
              configs=((1, 8),), tol=8e-2)
    print("KERNEL_OK")
</pallas_src>

<mosaic_0001>
module attributes {stable_mosaic.version = 11 : i64} {
  func.func @_conv_bn_silu_kernel(%arg0: i32, %arg1: i32, %arg2: memref<9x16x4xf32, #tpu.memory_space<vmem>>, %arg3: memref<16x1xf32, #tpu.memory_space<vmem>>, %arg4: memref<9x256xf32, #tpu.memory_space<vmem>>, %arg5: memref<1x4x256xf32, #tpu.memory_space<vmem>>, %arg6: memref<1x16x256xf32, #tpu.memory_space<vmem>>) attributes {dimension_semantics = [#tpu.dimension_semantics<parallel>, #tpu.dimension_semantics<parallel>], iteration_bounds = array<i64: 2, 1>, scalar_prefetch = 0 : i64, scratch_operands = 0 : i64, tpu.core_type = #tpu.core_type<tc>, window_params = [{transform_indices = @transform_0, window_bounds = array<i64: 9, 16, 4>}, {transform_indices = @transform_1, window_bounds = array<i64: 16, 1>}, {pipeline_mode = #tpu.pipeline_mode<synchronous>, transform_indices = @transform_2, window_bounds = array<i64: 9, 256>}, {transform_indices = @transform_3, window_bounds = array<i64: 1, 4, 256>}, {transform_indices = @transform_4, window_bounds = array<i64: 1, 16, 256>}]} {
    %c0 = arith.constant 0 : index
    %c0_0 = arith.constant 0 : index
    %c0_1 = arith.constant 0 : index
    %0 = vector.load %arg2[%c0, %c0_0, %c0_1] : memref<9x16x4xf32, #tpu.memory_space<vmem>>, vector<9x16x4xf32>
    %c0_2 = arith.constant 0 : index
    %c0_3 = arith.constant 0 : index
    %1 = vector.load %arg4[%c0_2, %c0_3] : memref<9x256xf32, #tpu.memory_space<vmem>>, vector<9x256xf32>
    %c0_4 = arith.constant 0 : index
    %c0_5 = arith.constant 0 : index
    %2 = vector.load %arg3[%c0_4, %c0_5] : memref<16x1xf32, #tpu.memory_space<vmem>>, vector<16x1xf32>
    %c0_6 = arith.constant 0 : index
    %c0_7 = arith.constant 0 : index
    %c0_8 = arith.constant 0 : index
    %3 = vector.load %arg5[%c0_6, %c0_7, %c0_8] : memref<1x4x256xf32, #tpu.memory_space<vmem>>, vector<1x4x256xf32>
    %4 = vector.shape_cast %3 : vector<1x4x256xf32> to vector<4x256xf32>
    %5 = vector.shape_cast %2 : vector<16x1xf32> to vector<16x1xf32>
    %6 = vector.broadcast %5 : vector<16x1xf32> to vector<16x256xf32>
    %c17_i32 = arith.constant 17 : i32
    %7 = tpu.dynamic_rotate %4 by %c17_i32 dim 1 : vector<4x256xf32>, i32 -> vector<4x256xf32>
    %8 = vector.extract_strided_slice %1 {offsets = [0, 0], sizes = [1, 256], strides = [1, 1]} : vector<9x256xf32> to vector<1x256xf32>
    %9 = vector.broadcast %8 : vector<1x256xf32> to vector<4x256xf32>
    %10 = arith.mulf %7, %9 : vector<4x256xf32>
    %11 = vector.extract_strided_slice %0 {offsets = [0, 0, 0], sizes = [1, 16, 4], strides = [1, 1, 1]} : vector<9x16x4xf32> to vector<1x16x4xf32>
    %12 = vector.shape_cast %11 : vector<1x16x4xf32> to vector<16x4xf32>
    %cst = arith.constant dense<0.000000e+00> : vector<16x256xf32>
    %13 = tpu.matmul %12, %10, %cst {dimension_numbers = #tpu.dot_dimension_numbers<[1], [0], [0], [1], [0, 0, 1, 1], [], []>} : vector<16x4xf32>, vector<4x256xf32>, vector<16x256xf32> -> vector<16x256xf32>
    %14 = arith.addf %6, %13 : vector<16x256xf32>
    %c16_i32 = arith.constant 16 : i32
    %15 = tpu.dynamic_rotate %4 by %c16_i32 dim 1 : vector<4x256xf32>, i32 -> vector<4x256xf32>
    %16 = vector.extract_strided_slice %1 {offsets = [1, 0], sizes = [1, 256], strides = [1, 1]} : vector<9x256xf32> to vector<1x256xf32>
    %17 = vector.broadcast %16 : vector<1x256xf32> to vector<4x256xf32>
    %18 = arith.mulf %15, %17 : vector<4x256xf32>
    %19 = vector.extract_strided_slice %0 {offsets = [1, 0, 0], sizes = [1, 16, 4], strides = [1, 1, 1]} : vector<9x16x4xf32> to vector<1x16x4xf32>
    %20 = vector.shape_cast %19 : vector<1x16x4xf32> to vector<16x4xf32>
    %cst_9 = arith.constant dense<0.000000e+00> : vector<16x256xf32>
    %21 = tpu.matmul %20, %18, %cst_9 {dimension_numbers = #tpu.dot_dimension_numbers<[1], [0], [0], [1], [0, 0, 1, 1], [], []>} : vector<16x4xf32>, vector<4x256xf32>, vector<16x256xf32> -> vector<16x256xf32>
    %22 = arith.addf %14, %21 : vector<16x256xf32>
    %c15_i32 = arith.constant 15 : i32
    %23 = tpu.dynamic_rotate %4 by %c15_i32 dim 1 : vector<4x256xf32>, i32 -> vector<4x256xf32>
    %24 = vector.extract_strided_slice %1 {offsets = [2, 0], sizes = [1, 256], strides = [1, 1]} : vector<9x256xf32> to vector<1x256xf32>
    %25 = vector.broadcast %24 : vector<1x256xf32> to vector<4x256xf32>
    %26 = arith.mulf %23, %25 : vector<4x256xf32>
    %27 = vector.extract_strided_slice %0 {offsets = [2, 0, 0], sizes = [1, 16, 4], strides = [1, 1, 1]} : vector<9x16x4xf32> to vector<1x16x4xf32>
    %28 = vector.shape_cast %27 : vector<1x16x4xf32> to vector<16x4xf32>
    %cst_10 = arith.constant dense<0.000000e+00> : vector<16x256xf32>
    %29 = tpu.matmul %28, %26, %cst_10 {dimension_numbers = #tpu.dot_dimension_numbers<[1], [0], [0], [1], [0, 0, 1, 1], [], []>} : vector<16x4xf32>, vector<4x256xf32>, vector<16x256xf32> -> vector<16x256xf32>
    %30 = arith.addf %22, %29 : vector<16x256xf32>
    %c1_i32 = arith.constant 1 : i32
    %31 = tpu.dynamic_rotate %4 by %c1_i32 dim 1 : vector<4x256xf32>, i32 -> vector<4x256xf32>
    %32 = vector.extract_strided_slice %1 {offsets = [3, 0], sizes = [1, 256], strides = [1, 1]} : vector<9x256xf32> to vector<1x256xf32>
    %33 = vector.broadcast %32 : vector<1x256xf32> to vector<4x256xf32>
    %34 = arith.mulf %31, %33 : vector<4x256xf32>
    %35 = vector.extract_strided_slice %0 {offsets = [3, 0, 0], sizes = [1, 16, 4], strides = [1, 1, 1]} : vector<9x16x4xf32> to vector<1x16x4xf32>
    %36 = vector.shape_cast %35 : vector<1x16x4xf32> to vector<16x4xf32>
    %cst_11 = arith.constant dense<0.000000e+00> : vector<16x256xf32>
    %37 = tpu.matmul %36, %34, %cst_11 {dimension_numbers = #tpu.dot_dimension_numbers<[1], [0], [0], [1], [0, 0, 1, 1], [], []>} : vector<16x4xf32>, vector<4x256xf32>, vector<16x256xf32> -> vector<16x256xf32>
    %38 = arith.addf %30, %37 : vector<16x256xf32>
    %39 = vector.extract_strided_slice %0 {offsets = [4, 0, 0], sizes = [1, 16, 4], strides = [1, 1, 1]} : vector<9x16x4xf32> to vector<1x16x4xf32>
    %40 = vector.shape_cast %39 : vector<1x16x4xf32> to vector<16x4xf32>
    %cst_12 = arith.constant dense<0.000000e+00> : vector<16x256xf32>
    %41 = tpu.matmul %40, %4, %cst_12 {dimension_numbers = #tpu.dot_dimension_numbers<[1], [0], [0], [1], [0, 0, 1, 1], [], []>} : vector<16x4xf32>, vector<4x256xf32>, vector<16x256xf32> -> vector<16x256xf32>
    %42 = arith.addf %38, %41 : vector<16x256xf32>
    %c255_i32 = arith.constant 255 : i32
    %43 = tpu.dynamic_rotate %4 by %c255_i32 dim 1 : vector<4x256xf32>, i32 -> vector<4x256xf32>
    %44 = vector.extract_strided_slice %1 {offsets = [5, 0], sizes = [1, 256], strides = [1, 1]} : vector<9x256xf32> to vector<1x256xf32>
    %45 = vector.broadcast %44 : vector<1x256xf32> to vector<4x256xf32>
    %46 = arith.mulf %43, %45 : vector<4x256xf32>
    %47 = vector.extract_strided_slice %0 {offsets = [5, 0, 0], sizes = [1, 16, 4], strides = [1, 1, 1]} : vector<9x16x4xf32> to vector<1x16x4xf32>
    %48 = vector.shape_cast %47 : vector<1x16x4xf32> to vector<16x4xf32>
    %cst_13 = arith.constant dense<0.000000e+00> : vector<16x256xf32>
    %49 = tpu.matmul %48, %46, %cst_13 {dimension_numbers = #tpu.dot_dimension_numbers<[1], [0], [0], [1], [0, 0, 1, 1], [], []>} : vector<16x4xf32>, vector<4x256xf32>, vector<16x256xf32> -> vector<16x256xf32>
    %50 = arith.addf %42, %49 : vector<16x256xf32>
    %c241_i32 = arith.constant 241 : i32
    %51 = tpu.dynamic_rotate %4 by %c241_i32 dim 1 : vector<4x256xf32>, i32 -> vector<4x256xf32>
    %52 = vector.extract_strided_slice %1 {offsets = [6, 0], sizes = [1, 256], strides = [1, 1]} : vector<9x256xf32> to vector<1x256xf32>
    %53 = vector.broadcast %52 : vector<1x256xf32> to vector<4x256xf32>
    %54 = arith.mulf %51, %53 : vector<4x256xf32>
    %55 = vector.extract_strided_slice %0 {offsets = [6, 0, 0], sizes = [1, 16, 4], strides = [1, 1, 1]} : vector<9x16x4xf32> to vector<1x16x4xf32>
    %56 = vector.shape_cast %55 : vector<1x16x4xf32> to vector<16x4xf32>
    %cst_14 = arith.constant dense<0.000000e+00> : vector<16x256xf32>
    %57 = tpu.matmul %56, %54, %cst_14 {dimension_numbers = #tpu.dot_dimension_numbers<[1], [0], [0], [1], [0, 0, 1, 1], [], []>} : vector<16x4xf32>, vector<4x256xf32>, vector<16x256xf32> -> vector<16x256xf32>
    %58 = arith.addf %50, %57 : vector<16x256xf32>
    %c240_i32 = arith.constant 240 : i32
    %59 = tpu.dynamic_rotate %4 by %c240_i32 dim 1 : vector<4x256xf32>, i32 -> vector<4x256xf32>
    %60 = vector.extract_strided_slice %1 {offsets = [7, 0], sizes = [1, 256], strides = [1, 1]} : vector<9x256xf32> to vector<1x256xf32>
    %61 = vector.broadcast %60 : vector<1x256xf32> to vector<4x256xf32>
    %62 = arith.mulf %59, %61 : vector<4x256xf32>
    %63 = vector.extract_strided_slice %0 {offsets = [7, 0, 0], sizes = [1, 16, 4], strides = [1, 1, 1]} : vector<9x16x4xf32> to vector<1x16x4xf32>
    %64 = vector.shape_cast %63 : vector<1x16x4xf32> to vector<16x4xf32>
    %cst_15 = arith.constant dense<0.000000e+00> : vector<16x256xf32>
    %65 = tpu.matmul %64, %62, %cst_15 {dimension_numbers = #tpu.dot_dimension_numbers<[1], [0], [0], [1], [0, 0, 1, 1], [], []>} : vector<16x4xf32>, vector<4x256xf32>, vector<16x256xf32> -> vector<16x256xf32>
    %66 = arith.addf %58, %65 : vector<16x256xf32>
    %c239_i32 = arith.constant 239 : i32
    %67 = tpu.dynamic_rotate %4 by %c239_i32 dim 1 : vector<4x256xf32>, i32 -> vector<4x256xf32>
    %68 = vector.extract_strided_slice %1 {offsets = [8, 0], sizes = [1, 256], strides = [1, 1]} : vector<9x256xf32> to vector<1x256xf32>
    %69 = vector.broadcast %68 : vector<1x256xf32> to vector<4x256xf32>
    %70 = arith.mulf %67, %69 : vector<4x256xf32>
    %71 = vector.extract_strided_slice %0 {offsets = [8, 0, 0], sizes = [1, 16, 4], strides = [1, 1, 1]} : vector<9x16x4xf32> to vector<1x16x4xf32>
    %72 = vector.shape_cast %71 : vector<1x16x4xf32> to vector<16x4xf32>
    %cst_16 = arith.constant dense<0.000000e+00> : vector<16x256xf32>
    %73 = tpu.matmul %72, %70, %cst_16 {dimension_numbers = #tpu.dot_dimension_numbers<[1], [0], [0], [1], [0, 0, 1, 1], [], []>} : vector<16x4xf32>, vector<4x256xf32>, vector<16x256xf32> -> vector<16x256xf32>
    %74 = arith.addf %66, %73 : vector<16x256xf32>
    %cst_17 = arith.constant 0.000000e+00 : f32
    %75 = vector.broadcast %cst_17 : f32 to vector<16x256xf32>
    %76 = arith.subf %75, %74 : vector<16x256xf32>
    %77 = math.exp %76 : vector<16x256xf32>
    %cst_18 = arith.constant 1.000000e+00 : f32
    %78 = vector.broadcast %cst_18 : f32 to vector<16x256xf32>
    %79 = arith.addf %78, %77 : vector<16x256xf32>
    %80 = tpu.reciprocal %79 : vector<16x256xf32> -> vector<16x256xf32>
    %81 = arith.mulf %74, %80 : vector<16x256xf32>
    %c0_19 = arith.constant 0 : index
    %c0_20 = arith.constant 0 : index
    %c0_21 = arith.constant 0 : index
    %82 = vector.load %arg6[%c0_19, %c0_20, %c0_21] : memref<1x16x256xf32, #tpu.memory_space<vmem>>, vector<1x16x256xf32>
    %83 = vector.shape_cast %82 : vector<1x16x256xf32> to vector<16x256xf32>
    %84 = vector.shape_cast %81 : vector<16x256xf32> to vector<1x16x256xf32>
    tpu.vector_store %arg6[%c0_19, %c0_20, %c0_21], %84 {strides = array<i32>} : memref<1x16x256xf32, #tpu.memory_space<vmem>>, vector<1x16x256xf32>,
    return
  }
  func.func @transform_0(%arg0: i32, %arg1: i32) -> (i32, i32, i32) {
    %c0_i32 = arith.constant 0 : i32
    %c0_i32_0 = arith.constant 0 : i32
    %c0_i32_1 = arith.constant 0 : i32
    return %c0_i32, %arg1, %c0_i32_0 : i32, i32, i32
  }
  func.func @transform_1(%arg0: i32, %arg1: i32) -> (i32, i32) {
    %c0_i32 = arith.constant 0 : i32
    %c0_i32_0 = arith.constant 0 : i32
    return %arg1, %c0_i32 : i32, i32
  }
  func.func @transform_2(%arg0: i32, %arg1: i32) -> (i32, i32) {
    %c0_i32 = arith.constant 0 : i32
    %c0_i32_0 = arith.constant 0 : i32
    %c0_i32_1 = arith.constant 0 : i32
    return %c0_i32, %c0_i32_0 : i32, i32
  }
  func.func @transform_3(%arg0: i32, %arg1: i32) -> (i32, i32, i32) {
    %c0_i32 = arith.constant 0 : i32
    %c0_i32_0 = arith.constant 0 : i32
    %c0_i32_1 = arith.constant 0 : i32
    return %arg0, %c0_i32, %c0_i32_0 : i32, i32, i32
  }
  func.func @transform_4(%arg0: i32, %arg1: i32) -> (i32, i32, i32) {
    %c0_i32 = arith.constant 0 : i32
    %c0_i32_0 = arith.constant 0 : i32
    return %arg0, %arg1, %c0_i32 : i32, i32, i32
  }
}

</mosaic_0001>

<bundles_post_ra>
// kernel: tpu_custom_call.1
= control target key start
LH: loop header
LB: loop body
LE: loop exit
PB: predicated region body
PF: predicated region fallthrough
CT: control target
= control target key end

     0   :  { %9 = vsyncpa [#allocation3], 0  ;;  %s2036_s0 = inlined_call_operand.vmem [shape: f32[9,16,4], index: 0, kind: input, shape index: {}]   ;;  %s2037_s1 = inlined_call_operand.vmem [shape: f32[16,1], index: 1, kind: input, shape index: {}]   ;;  %s2038_s2 = inlined_call_operand.vmem [shape: f32[9,256], index: 2, kind: input, shape index: {}]   ;;  %s2039_s3 = inlined_call_operand.vmem [shape: f32[2,4,256], index: 3, kind: input, shape index: {}]   ;;  %s2040_s4 = inlined_call_operand.hbm [shape: f32[2,16,256], index: 4, kind: output, shape index: {}]  }
   0x1   :  { %11 = vsyncpa [#allocation3 + $0x1], 0  ;;  %s1711_s15 = smov 0   ;;  %s1713_s16 = smov 0  }
   0x2   :  { %s1715_s17 = smov 0   ;;  %s1717_s18 = smov 0  }
   0x3   :  { %s1719_s19 = smov 0   ;;  %s1721_s20 = smov 0  }
   0x4 LB: > { %s1416_s21 = sadd.s32 4294967295, %s1672_s20   ;;  %s1417_s22 = sadd.s32 4294967294, %s1672_s20   ;;  %s1672_s20 = sphi %s1721_s20, %s17_s20   ;;  %s1668_s19 = sphi %s1719_s19, %s2047_s19   ;;  %s1664_s18 = sphi %s1717_s18, %s2046_s18   ;;  %s1660_s17 = sphi %s1715_s17, %s2045_s17   ;;  %s1656_s16 = sphi %s1713_s16, %s2044_s16   ;;  %s1652_s15 = sphi %s1711_s15, %s2043_s15  }
   0x5   : > { %s29_s23 = sadd.s32 1, %s1668_s19  ;;  %s137_s24 = sadd.s32 1, %s1660_s17 }
   0x6   : > { %p31_p0 = scmp.ge.s32.totalorder %s29_s23, 2  ;;  %p147_p1 = scmp.ne.s32.totalorder %s1660_s17, %s1656_s16 }
   0x7   : > { %p148_p2 = scmp.eq.s32.totalorder %s1416_s21, 1  ;;  %p153_p3 = scmp.ne.s32.totalorder %s1656_s16, %s1652_s15 }
   0x8   : > { %s2049_s23 = smov (%p31_p0, %s29_s23), 0  ;;  %p154_p5 = scmp.eq.s32.totalorder %s1417_s22, 1 }
   0x9   : > { %p1751_p4 = por %p148_p2, %p147_p1  ;;  %s132_s26 = ssub.s32 %s1668_s19, %s2049_s23 }
   0xa   : > { %p1422_p6 = scmp.ge.s32.totalorder %s1672_s20, 1  ;;  %p135_p7 = scmp.eq.s32.totalorder %s132_s26, 0 }
   0xb   : > { %p1758_p8 = por %p154_p5, %p153_p3  ;;  %p201_p9 = scmp.lt.s32.totalorder %s1672_s20, 3 }
   0xc   : > { %s1764_s28 = scalar_select %p135_p7, %s1660_s17, %s137_s24  }
   0xd   : > { %p202_p10 = pnand %p1422_p6, %p201_p9 }
   0xe   : > { %p249_p11 = scmp.lt.s32.totalorder (!%p202_p10), %s1664_s18, 1  ;;  %v1674_v0 = vmov (!%p202_p10), 0.0   ;;  %vm319_vm0 = vcmask (!%p202_p10), 1043456   ;;  %s1675_s8 = smov (!%p202_p10), 16   ;;  %v263_v3 = vld [vmem:[%s2036_s0 + $0x40] sm:$0xff] (!%p202_p10)  ;;  %vm312_vm1 = vcmask (!%p202_p10), 31744   ;;  %v297_v7 = vlaneseq (!%p202_p10) }
   0xf   : > { %205 = sbr.rel (%p202_p10) target bundleno = 449 (0x1c1), region = 36  ;;  %811 = vmatprep.mubr.f32.mxu0 (!%p202_p10), %v1674_v0  ;;  %390 = vmatprep.mubr.f32.mxu1 (!%p202_p10), %v1674_v0  ;;  %s1676_s9 = smov (!%p202_p10), 17   ;;  %v277_v4 = vld [vmem:[%s2037_s1] sm:$0xff] (!%p202_p10)  ;;  %v278_v5 = vld [vmem:[%s2037_s1 + $0x8] sm:$0xff] (!%p202_p10)  ;;  %v1683_v6 = vmov (!%p202_p10), 0   ;;  %v265_v45 = vld [vmem:[%s2036_s0 + $0x50] sm:$0xff] (!%p202_p10) }
  0x10   : > { %s1677_s12 = smov (!%p202_p10), 127   ;;  %s1678_s13 = smov (!%p202_p10), 15   ;;  %1575 = vset.pattern.permute.xlu0 (!%p202_p10), %v1683_v6  ;;  %1576 = vset.pattern.permute.xlu1 (!%p202_p10), %v1683_v6  ;;  %v1812_v8 = vshrl.u32 (!%p202_p10), %v297_v7, 7  ;;  %v1814_v9 = vand.u32 (!%p202_p10), 127, %v297_v7  ;;  %v1821_v12 = vld [vmem:[%s2038_s2] sm:$0xff] (!%p202_p10)  ;;  %v1826_v13 = vld [vmem:[%s2038_s2 + $0x8] sm:$0xff] (!%p202_p10) }
  0x11   : > { %s1679_s14 = smov (!%p202_p10), 113   ;;  %s1680_s21 = smov (!%p202_p10), 1   ;;  %v255_v34 = vld [vmem:[%s2036_s0] sm:$0xff] (!%p202_p10)  ;;  %v256_v44 = vld [vmem:[%s2036_s0 + $0x8] sm:$0xff] (!%p202_p10)  ;;  %v257_v55 = vld [vmem:[%s2036_s0 + $0x10] sm:$0xff] (!%p202_p10) }
  0x12   : > { %s1681_s22 = smov (!%p202_p10), 112   ;;  %s1682_s24 = smov (!%p202_p10), 111   ;;  %v416_v10 = vsub.s32 (!%p202_p10), 1, %v1812_v8  ;;  %v304_v11 = vsub.s32 (!%p202_p10), 0, %v1812_v8  ;;  %v837_v16 = vsub.s32 (!%p202_p10), 5, %v1812_v8  ;;  %vm411_vm2 = vcmp.lt.s32.totalorder (!%p202_p10), %v1814_v9, 16 }
  0x13   : > { %vm299_vm3 = vcmp.lt.s32.totalorder (!%p202_p10), %v1814_v9, 17  ;;  %vm832_vm4 = vcmp.lt.s32.totalorder (!%p202_p10), %v1814_v9, 127  ;;  %v526_v24 = vsub.s32 (!%p202_p10), 2, %v1812_v8  ;;  %vm521_vm5 = vcmp.lt.s32.totalorder (!%p202_p10), %v1814_v9, 15  ;;  %v266_v56 = vld [vmem:[%s2036_s0 + $0x58] sm:$0xff] (!%p202_p10)  ;;  %v267_v6 = vld [vmem:[%s2036_s0 + $0x60] sm:$0xff] (!%p202_p10) }
  0x14   : > { %v421_v17 = vrot.slane (!%p202_p10), %v1826_v13, %v416_v10  ;;  %v305_v18 = vrot.slane (!%p202_p10), %v1821_v12, %v304_v11  ;;  %v309_v19 = vrot.slane (!%p202_p10), %v1826_v13, %v304_v11  ;;  %v417_v20 = vrot.slane (!%p202_p10), %v1821_v12, %v416_v10 }
  0x15   : > { %v838_v23 = vrot.slane (!%p202_p10), %v1821_v12, %v837_v16  ;;  %v842_v32 = vrot.slane (!%p202_p10), %v1826_v13, %v837_v16  ;;  %v531_v41 = vrot.slane (!%p202_p10), %v1826_v13, %v526_v24  ;;  %v947_v42 = vsub.s32 (!%p202_p10), 6, %v1812_v8 }
  0x16   : > { %s250_s29 = scalar_select %p249_p11, %s1664_s18, 1  ;;  %v527_v43 = vrot.slane %v1821_v12, %v526_v24  ;;  %vm942_vm6 = vcmp.lt.s32.totalorder %v1814_v9, 113  ;;  %v636_v53 = vsub.s32 3, %v1812_v8  ;;  %vm631_vm7 = vcmp.lt.s32.totalorder %v1814_v9, 1  ;;  %v260_v24 = vld [vmem:[%s2036_s0 + $0x28] sm:$0xff] }
  0x17   : > { %v948_v51 = vrot.slane %v1821_v12, %v947_v42  ;;  %v952_v52 = vrot.slane %v1826_v13, %v947_v42  ;;  %vm1052_vm8 = vcmp.lt.s32.totalorder %v1814_v9, 112  ;;  %vm1162_vm9 = vcmp.lt.s32.totalorder %v1814_v9, 111 }
  0x18   : > { %s1469_s30 = sshll.u32 %s250_s29, 3  ;;  %v641_v63 = vrot.slane %v1826_v13, %v636_v53  ;;  %s234_s29 = sand.u32 1, %s1656_s16  }
  0x19   : > { %s253_s7 = scalar_lea.vmem %s2039_s3, %s1469_s30  ;;  %s1423_s30 = sshll.u32 %s234_s29, 5 }
  0x1a   : > { %v1773_v1 = vld [vmem:[%s253_s7] sm:$0xff]  ;;  %s236_s5 = scalar_lea.vmem [#allocation2], %s1423_s30  ;;  %s1470_s7 = sshll.u32 %s1664_s18, 9 }
  0x1b   : > { %407 = vrot.lane.b32.xlu1 %v1773_v1, %s1675_s8  ;;  %293 = vrot.lane.b32.xlu0 %v1773_v1, %s1676_s9  ;;  %v1780_v2 = vcombine.high %v1773_v1, %v1773_v1  ;;  %s1313_s6 = sshll.u32 %s236_s5, 4  ;;  %s1987_s11 = scalar_lea.hbm %s2040_s4, %s1470_s7  ;;  %s1982_s6 = int_to_ptr.vmem [resolvable:$true] %s1313_s6 }
  0x1c   : > { %s1684_s18 = smov [#allocation2]  }
  0x1d   : > { %1442 = vmatprep.subr.msk.mxu0 %vm319_vm0, %v1780_v2 }
  0x1e   : > { %1443 = vmatpush1.msk.msra.mxu0 %vm319_vm0, %v1773_v1 }
  0x1f   : > { %409 = vrot.lane.b32.xlu1 %v1780_v2, %s1675_s8  ;;  %295 = vrot.lane.b32.xlu0 %v1780_v2, %s1676_s9 }
  0x20   : > { %1444 = vmatmul.mubr.msk.f32.vlgmr.msra.gmra.mrb[0].mxu0 %vm312_vm1, %v263_v3  ;;  %v1057_v3 = vsub.s32 7, %v1812_v8 }
  0x21   : > { %921 = vmatprep.mubr.f32.mxu0 %v1674_v0 }
  0x22   : > { %v1062_v16 = vrot.slane %v1826_v13, %v1057_v3 }
  0x23   : > { %830 = vrot.lane.b32.xlu1 %v1780_v2, %s1677_s12  ;;  %828 = vrot.lane.b32.xlu0 %v1773_v1, %s1677_s12  ;;  %s1989_s12 = scalar_lea.sflag [#allocation3], %s234_s29 }
  0x27   : > { %519 = vrot.lane.b32.xlu1 %v1780_v2, %s1678_s13  ;;  %517 = vrot.lane.b32.xlu0 %v1773_v1, %s1678_s13  ;;  %s1594_s13 = scalar_lea.vmem %s1982_s6, 512 }
  0x28   : > { %p1595_p12 = scmp.ne.s32.totalorder %s1982_s6, %s1594_s13 }
  0x2a   : > { %p1596_p13 = pnand %p1595_p12, %p1751_p4 }
  0x2b   : > { %940 = vrot.lane.b32.xlu1 %v1780_v2, %s1679_s14  ;;  %938 = vrot.lane.b32.xlu0 %v1773_v1, %s1679_s14  ;;  %s1598_s14 = sshll.u32 %s1684_s18, 4  ;;  %s1599_s14 = int_to_ptr.vmem [resolvable:$false] %s1598_s14 }
  0x2c   : > { %p1597_p0 = pneg %p1596_p13  ;;  %p1601_p1 = scmp.lt.s32.totalorder %s1982_s6, %s1599_s14 }
  0x2f   : > { %629 = vrot.lane.b32.xlu1 %v1780_v2, %s1680_s21  ;;  %627 = vrot.lane.b32.xlu0 %v1773_v1, %s1680_s21  ;;  %s1600_s21 = scalar_lea.vmem %s1599_s14, 1024 }
  0x30   : > { %p1602_p2 = scmp.lt.s32.totalorder %s1600_s21, %s1594_s13 }
  0x32   : > { %p1603_p3 = por %p1602_p2, %p1601_p1 }
  0x33   : > { %1050 = vrot.lane.b32.xlu1 %v1780_v2, %s1681_s22  ;;  %1048 = vrot.lane.b32.xlu0 %v1773_v1, %s1681_s22 }
  0x34   : > { %p1604_p5 = pnand %p1603_p3, %p1597_p0 }
  0x37   : > { %1160 = vrot.lane.b32.xlu1 %v1780_v2, %s1682_s24  ;;  %1158 = vrot.lane.b32.xlu0 %v1773_v1, %s1682_s24 }
  0x3b   : > { %282 = vperm.xlu0 %1575, %v277_v4   ;;  %287 = vperm.xlu1 %1576, %v278_v5   ;;  %v637_v4 = vrot.slane %v1821_v12, %v636_v53  ;;  %v258_v5 = vld [vmem:[%s2036_s0 + $0x18] sm:$0xff] }
  0x8d   : > { %v408_v14 = vpop.permute.xlu1 %407  ;;  %v294_v15 = vpop.permute.xlu0 %293 }
  0x91   : > { %v410_v21 = vpop.permute.xlu1 %409  ;;  %v296_v22 = vpop.permute.xlu0 %295 }
  0x92   : > { %v412_v25 = vsel %vm411_vm2, %v408_v14, %v410_v21  ;;  %v413_v26 = vsel %vm411_vm2, %v410_v21, %v408_v14  ;;  %v300_v27 = vsel %vm299_vm3, %v294_v15, %v296_v22  ;;  %v301_v28 = vsel %vm299_vm3, %v296_v22, %v294_v15 }
  0x93   : > { %v423_v29 = vmul.f32 %v421_v17, %v412_v25  ;;  %v310_v30 = vmul.f32 %v305_v18, %v301_v28  ;;  %v311_v31 = vmul.f32 %v309_v19, %v300_v27  ;;  %v422_v33 = vmul.f32 %v417_v20, %v413_v26  ;;  %v259_v18 = vld [vmem:[%s2036_s0 + $0x20] sm:$0xff]  ;;  %v268_v19 = vld [vmem:[%s2036_s0 + $0x68] sm:$0xff]  ;;  %v269_v25 = vld [vmem:[%s2036_s0 + $0x70] sm:$0xff] }
  0x94   : > { %v1058_v15 = vrot.slane %v1821_v12, %v1057_v3  ;;  %v1458_v26 = vld [vmem:[%s2038_s2 + $0x10] ss:$0 sm:$0xff]  ;;  %v1459_v27 = vld [vmem:[%s2038_s2 + $0x18] ss:$0 sm:$0xff] }
  0x95   : > { %v831_v35 = vpop.permute.xlu1 %830  ;;  %1426 = vmatprep.subr.msk.mxu1 %vm319_vm0, %v311_v31  ;;  %v829_v36 = vpop.permute.xlu0 %828 }
  0x96   : > { %v833_v37 = vsel %vm832_vm4, %v829_v36, %v831_v35  ;;  %v834_v38 = vsel %vm832_vm4, %v831_v35, %v829_v36  ;;  %1427 = vmatpush1.msk.msra.mxu1 %vm319_vm0, %v310_v30  ;;  %v271_v35 = vld [vmem:[%s2036_s0 + $0x80] sm:$0xff]  ;;  %v264_v36 = vld [vmem:[%s2036_s0 + $0x48] sm:$0xff] }
  0x97   : > { %v843_v39 = vmul.f32 %v838_v23, %v833_v37  ;;  %v844_v40 = vmul.f32 %v842_v32, %v834_v38  ;;  %1428 = vmatmul.mubr.msk.f32.vlgmr.msra.gmra.mrb[0].mxu1 %vm312_vm1, %v255_v34  ;;  %1430 = vmatprep.subr.msk.mxu1 %vm319_vm0, %v423_v29  ;;  %v270_v34 = vld [vmem:[%s2036_s0 + $0x78] sm:$0xff] }
  0x98   : > { %1431 = vmatpush1.msk.msra.mxu1 %vm319_vm0, %v422_v33  ;;  %396 = vmatprep.mubr.f32.mxu1 %v1674_v0  ;;  %v261_v33 = vld [vmem:[%s2036_s0 + $0x30] sm:$0xff] }
  0x99   : > { %v520_v46 = vpop.permute.xlu1 %519  ;;  %v518_v47 = vpop.permute.xlu0 %517  ;;  %1446 = vmatprep.subr.msk.mxu0 %vm319_vm0, %v844_v40 }
  0x9a   : > { %v522_v48 = vsel %vm521_vm5, %v518_v47, %v520_v46  ;;  %v523_v49 = vsel %vm521_vm5, %v520_v46, %v518_v47  ;;  %1447 = vmatpush1.msk.msra.mxu0 %vm319_vm0, %v843_v39 }
  0x9b   : > { %v533_v50 = vmul.f32 %v531_v41, %v522_v48  ;;  %1429 = vmatmul.mubr.msk.f32.gmra.mrb[2].mxu1 %vm312_vm1, %v256_v44  ;;  %1448 = vmatmul.mubr.msk.f32.vlgmr.msra.gmra.mrb[0].mxu0 %vm312_vm1, %v265_v45  ;;  %v532_v54 = vmul.f32 %v527_v43, %v523_v49 }
  0x9c   : > { %500 = vmatprep.mubr.f32.mxu1 %v1674_v0  ;;  %927 = vmatprep.mubr.f32.mxu0 %v1674_v0 }
  0x9d   : > { %v941_v57 = vpop.permute.xlu1 %940  ;;  %1434 = vmatprep.subr.msk.mxu1 %vm319_vm0, %v533_v50  ;;  %v939_v58 = vpop.permute.xlu0 %938 }
  0x9e   : > { %v943_v59 = vsel %vm942_vm6, %v939_v58, %v941_v57  ;;  %v944_v60 = vsel %vm942_vm6, %v941_v57, %v939_v58 }
  0x9f   : > { %v953_v61 = vmul.f32 %v948_v51, %v943_v59  ;;  %v954_v62 = vmul.f32 %v952_v52, %v944_v60  ;;  %1432 = vmatmul.mubr.msk.f32.vlgmr.msra.gmra.mrb[0].mxu1 %vm312_vm1, %v257_v55  ;;  %1449 = vmatmul.mubr.msk.f32.gmra.mrb[2].mxu0 %vm312_vm1, %v266_v56 }
  0xa0   : > { %1435 = vmatpush1.msk.msra.mxu1 %vm319_vm0, %v532_v54  ;;  %506 = vmatprep.mubr.f32.mxu1 %v1674_v0 }
  0xa1   : > { %v630_v7 = vpop.permute.xlu1 %629  ;;  %v628_v10 = vpop.permute.xlu0 %627  ;;  %1450 = vmatprep.subr.msk.mxu0 %vm319_vm0, %v954_v62  ;;  %1031 = vmatprep.mubr.f32.mxu0 %v1674_v0 }
  0xa2   : > { %v632_v8 = vsel %vm631_vm7, %v628_v10, %v630_v7  ;;  %v633_v11 = vsel %vm631_vm7, %v630_v7, %v628_v10  ;;  %1451 = vmatpush1.msk.msra.mxu0 %vm319_vm0, %v953_v61 }
  0xa3   : > { %v643_v14 = vmul.f32 %v641_v63, %v632_v8  ;;  %1433 = vmatmul.mubr.msk.f32.gmra.mrb[2].mxu1 %vm312_vm1, %v258_v5  ;;  %1452 = vmatmul.mubr.msk.f32.vlgmr.msra.gmra.mrb[0].mxu0 %vm312_vm1, %v267_v6  ;;  %v642_v17 = vmul.f32 %v637_v4, %v633_v11 }
  0xa4   : > { %610 = vmatprep.mubr.f32.mxu1 %v1674_v0  ;;  %1037 = vmatprep.mubr.f32.mxu0 %v1674_v0 }
  0xa5   : > { %v1051_v20 = vpop.permute.xlu1 %1050  ;;  %1438 = vmatprep.subr.msk.mxu1 %vm319_vm0, %v643_v14  ;;  %v1049_v21 = vpop.permute.xlu0 %1048 }
  0xa6   : > { %v1053_v12 = vsel %vm1052_vm8, %v1049_v21, %v1051_v20  ;;  %v1054_v22 = vsel %vm1052_vm8, %v1051_v20, %v1049_v21 }
  0xa7   : > { %v1063_v13 = vmul.f32 %v1058_v15, %v1053_v12  ;;  %v1064_v23 = vmul.f32 %v1062_v16, %v1054_v22  ;;  %1436 = vmatmul.mubr.msk.f32.vlgmr.msra.gmra.mrb[0].mxu1 %vm312_vm1, %v259_v18  ;;  %1453 = vmatmul.mubr.msk.f32.gmra.mrb[2].mxu0 %vm312_vm1, %v268_v19 }
  0xa8   : > { %1439 = vmatpush1.msk.msra.mxu1 %vm319_vm0, %v642_v17  ;;  %616 = vmatprep.mubr.f32.mxu1 %v1674_v0 }
  0xa9   : > { %1454 = vmatprep.subr.msk.mxu0 %vm319_vm0, %v1064_v23  ;;  %1141 = vmatprep.mubr.f32.mxu0 %v1674_v0  ;;  %v1161_v9 = vpop.permute.xlu1 %1160  ;;  %v1159_v28 = vpop.permute.xlu0 %1158 }
  0xaa   : > { %1455 = vmatpush1.msk.msra.mxu0 %vm319_vm0, %v1063_v13  ;;  %v1163_v29 = vsel %vm1162_vm9, %v1159_v28, %v1161_v9  ;;  %v1164_v30 = vsel %vm1162_vm9, %v1161_v9, %v1159_v28  ;;  %1471 = vmatprep.subr.msk.mxu1 %vm319_vm0, %v1780_v2  ;;  %v262_v2 = vld [vmem:[%s2036_s0 + $0x38] sm:$0xff] }
  0xab   : > { %1437 = vmatmul.mubr.msk.f32.gmra.mrb[2].mxu1 %vm312_vm1, %v260_v24  ;;  %1456 = vmatmul.mubr.msk.f32.vlgmr.msra.gmra.mrb[0].mxu0 %vm312_vm1, %v269_v25  ;;  %v1173_v31 = vmul.f32 %v1458_v26, %v1163_v29  ;;  %v1174_v32 = vmul.f32 %v1459_v27, %v1164_v30 }
  0xac   : > { %720 = vmatprep.mubr.f32.mxu1 %v1674_v0  ;;  %1147 = vmatprep.mubr.f32.mxu0 %v1674_v0 }
  0xad   : > { %1460 = vmatprep.subr.msk.mxu0 %vm319_vm0, %v1174_v32 }
  0xae   : > { %1461 = vmatpush1.msk.msra.mxu0 %vm319_vm0, %v1173_v31 }
  0xaf   : > { %1440 = vmatmul.mubr.msk.f32.vlgmr.msra.gmra.mrb[0].mxu1 %vm312_vm1, %v261_v33  ;;  %1457 = vmatmul.mubr.msk.f32.gmra.mrb[2].mxu0 %vm312_vm1, %v270_v34 }
  0xb0   : > { %1472 = vmatpush1.msk.msra.mxu1 %vm319_vm0, %v1773_v1  ;;  %726 = vmatprep.mubr.f32.mxu1 %v1674_v0  ;;  %v272_v1 = vld [vmem:[%s2036_s0 + $0x88] sm:$0xff] }
  0xb1   : > { %1251 = vmatprep.mubr.f32.mxu0 %v1674_v0 }
  0xb3   : > { %1441 = vmatmul.mubr.msk.f32.gmra.mrb[2].mxu1 %vm312_vm1, %v262_v2  ;;  %1462 = vmatmul.mubr.msk.f32.vlgmr.msra.gmra.mrb[0].mxu0 %vm312_vm1, %v271_v35 }
  0xb4   : > { %1257 = vmatprep.mubr.f32.mxu0 %v1674_v0  ;;  %817 = vmatprep.mubr.f32.mxu1 %v1674_v0 }
  0xb7   : > { %1463 = vmatmul.mubr.msk.f32.gmra.mrb[2].mxu0 %vm312_vm1, %v272_v1 }
  0xba   : > { %v283_v38 = vpop.permute.xlu0 %282  ;;  %v288_v51 = vpop.permute.xlu1 %287 }
  0xbb   : > { %1445 = vmatmul.mubr.msk.f32.vlgmr.msra.gmra.mrb[2].mxu1 %vm312_vm1, %v264_v36 }
 0x182   : > { %v722_v37 = vpop.f32.mrb[0].mxu1 }
 0x183   : > { %v724_v39 = vpop.f32.mrb[1].mxu1  ;;  %v1473_v40 = vadd.f32 %v722_v37, %v283_v38 }
 0x184   : > { %v1475_v41 = vadd.f32 %v724_v39, %v283_v38 }
 0x186   : > { %v1253_v42 = vpop.f32.mrb[0].mxu0 }
 0x187   : > { %v1474_v43 = vadd.f32 %v1473_v40, %v1253_v42  ;;  %v1255_v44 = vpop.f32.mrb[1].mxu0 }
 0x188   : > { %v1476_v45 = vadd.f32 %v1475_v41, %v1255_v44 }
 0x189   : > { %v1268_v46 = vsub.f32 0.0, %v1474_v43 }
 0x18a   : > { %v1269_v47 = vsub.f32 0.0, %v1476_v45  ;;  %v1259_v0 = vpop.f32.mrb[2].mxu0 }
 0x18b   : > { %v1272_v48 = vmul.f32 1.442695, %v1268_v46  ;;  %v1261_v49 = vpop.f32.mrb[3].mxu0 }
 0x18c   : > { %v1274_v50 = vmul.f32 1.442695, %v1269_v47 }
 0x18d   : > { %1578 = vpow2.f32 %v1272_v48 }
 0x18e   : > { %1580 = vpow2.f32 %v1274_v50  ;;  %v819_v52 = vpop.f32.mrb[2].mxu1 }
 0x18f   : > { %v1477_v53 = vadd.f32 %v819_v52, %v288_v51  ;;  %v821_v54 = vpop.f32.mrb[3].mxu1 }
 0x190   : > { %v1479_v55 = vadd.f32 %v821_v54, %v288_v51 }
 0x191   : > { %v1478_v56 = vadd.f32 %v1477_v53, %v1259_v0 }
 0x192   : > { %v1480_v57 = vadd.f32 %v1479_v55, %v1261_v49 }
 0x193   : > { %v1270_v58 = vsub.f32 0.0, %v1478_v56 }
 0x194   : > { %v1271_v59 = vsub.f32 0.0, %v1480_v57 }
 0x195   : > { %v1276_v60 = vmul.f32 1.442695, %v1270_v58 }
 0x196   : > { %v1278_v61 = vmul.f32 1.442695, %v1271_v59 }
 0x197   : > { %v1579_v62 = vpop.eup %1578  ;;  %1582 = vpow2.f32 %v1276_v60 }
 0x198   : > { %v1581_v63 = vpop.eup %1580  ;;  %v1280_v3 = vadd.f32 1.0, %v1579_v62  ;;  %1584 = vpow2.f32 %v1278_v61 }
 0x199   : > { %v1281_v4 = vadd.f32 1.0, %v1581_v63 }
 0x19a   : > { %1586 = vrcp.f32 %v1280_v3 }
 0x19b   : > { %1588 = vrcp.f32 %v1281_v4 }
 0x1a1   : > { %v1583_v5 = vpop.eup %1582 }
 0x1a2   : > { %v1585_v6 = vpop.eup %1584  ;;  %v1282_v7 = vadd.f32 1.0, %v1583_v5 }
 0x1a3   : > { %v1283_v10 = vadd.f32 1.0, %v1585_v6 }
 0x1a4   : > { %v1587_v8 = vpop.eup %1586  ;;  %1590 = vrcp.f32 %v1282_v7 }
 0x1a5   : > { %v1589_v11 = vpop.eup %1588  ;;  %v1288_v14 = vmul.f32 %v1587_v8, %v1474_v43  ;;  %1592 = vrcp.f32 %v1283_v10 }
 0x1a6   : > { %v1289_v15 = vmul.f32 %v1589_v11, %v1476_v45 }
 0x1a7   : > { %1292 = vst [vmem:[%s236_s5] sm:$0xff] %v1288_v14 }
 0x1a8   : > { %1293 = vst [vmem:[%s236_s5 + $0x8] sm:$0xff] %v1289_v15 }
 0x1ae   : > { %v1591_v16 = vpop.eup %1590 }
 0x1af   : > { %v1593_v17 = vpop.eup %1592  ;;  %v1290_v18 = vmul.f32 %v1591_v16, %v1478_v56 }
 0x1b0   : > { %v1291_v19 = vmul.f32 %v1593_v17, %v1480_v57 }
 0x1b1   : > { %1294 = vst [vmem:[%s236_s5 + $0x10] sm:$0xff] %v1290_v18 }
 0x1b2   : > { %1295 = vst [vmem:[%s236_s5 + $0x18] sm:$0xff] %v1291_v19 }
 0x1b3   : > { %1607 = shalt.err (!%p1604_p5)
}
 0x1b4   : > { %s1608_s22 = scalar_lea.hbm %s1987_s11, 512  ;;  %s1612_s29 = scalar_lea.hbm %s2040_s4, 1024 }
 0x1b5   : > { %p1609_p6 = scmp.ne.s32.totalorder %s1987_s11, %s1608_s22  ;;  %p1613_p10 = scmp.lt.u32.totalorder %s1987_s11, %s2040_s4 }
 0x1b6   : > { %p1614_p11 = scmp.lt.u32.totalorder %s1612_s29, %s1608_s22  ;;  %p1616_p13 = scmp.lt.u32.totalorder %s1608_s22, %s1987_s11 }
 0x1b7   : > { %p1610_p7 = pnand %p1609_p6, %p1751_p4 }
 0x1b8   : > { %p1615_p12 = por %p1614_p11, %p1613_p10 }
 0x1b9   : > { %p1611_p9 = pneg %p1610_p7 }
 0x1ba   : > { %p1617_p0 = por %p1616_p13, %p1615_p12 }
 0x1bc   : > { %p1618_p1 = pnand %p1617_p0, %p1611_p9 }
 0x1be   : > { %1621 = shalt.err (!%p1618_p1)
}
 0x1bf   : > { %s1685_s7 = smov 256  }
 0x1c0   : > { %1509 = dma.vmem_to_hbm [thread:$0]  (%p1751_p4), %s1982_s6, 512, %s1987_s11, %s1989_s12, %s1685_s7, %s1685_s7, %s1675_s8  }
 0x1c1 PF: > { %p1515_p2 = scmp.ge.s32.totalorder %s1672_s20, 2  ;;  %s1328_s9 = sand.u32 1, %s1652_s15  }
 0x1c2   : > { %s1329_s10 = scalar_lea.sflag [#allocation3], %s1328_s9 }
 0x1c3   : > { %p1512_p3 = pnand %p1515_p2, %p1758_p8 }
 0x1c5   : > { %1647 = dma.done.wait (!%p1512_p3), %s1329_s10, 512  }
 0x1c6   : > { %1649 = vsyncadd (!%p1512_p3), %s1329_s10, 4294966784  ;;  %s17_s20 = sadd.s32 1, %s1672_s20   ;;  %s2043_s15 = smov %s1656_s16 }
 0x1c7   : > { %p14_p5 = scmp.ge.s32.totalorder %s17_s20, 4   ;;  %s2044_s16 = smov %s1660_s17 }
 0x1c8   : > { %s2045_s17 = smov %s1764_s28  ;;  %s2046_s18 = smov %s1668_s19 }
 0x1c9   : > { %s2047_s19 = smov %s2049_s23  ;;  %16 = sbr.rel (!%p14_p5) target bundleno = 4 (0x4), region = 77 }
 0x1d0   :  { %1334 = vsyncpa [#allocation3], 1 }
 0x1d1   :  { %1336 = vsyncpa [#allocation3 + $0x1], 1 }

</bundles_post_ra>
